<compile_context>
chip_gen: v7x
topology: tpu7x:2x2x1
jax: 0.10.0
libtpu: 0.0.40
codegen_flags: <defaults>
</compile_context>

<pallas_src>
import functools

import jax
import jax.numpy as jnp
from jax.experimental import pallas as pl
from jax.experimental.pallas import tpu as pltpu


def _tv_kernel(x_ref, map_ref, out_ref, acc_h_ref, acc_w_ref, mh_ref, mw_ref, *,
               shift_h, shift_w, inv_h, inv_w, steps, inner, guard):
    """grid = (n_par 'parallel', inner 'arbitrary'); one (bc_tile, HW) slab/step."""
    p = pl.program_id(0)
    i = pl.program_id(1)

    @pl.when(i == 0)
    def _init():
        # Boundary masks, built once per core, pre-scaled by 1/count.  The
        # row/col maps are rolled with the same primitive/shift as the data, so
        # the masks stay consistent with the hardware roll direction.
        m = map_ref[...]                      # (2, HW) int32: row ids / col ids
        r, c = m[0:1, :], m[1:2, :]
        rh = pltpu.roll(r, shift_h, 1)
        rw = pltpu.roll(r, shift_w, 1)
        cw = pltpu.roll(c, shift_w, 1)
        mh_ref[...] = (jnp.abs(rh - r) == 1).astype(jnp.float32) * inv_h
        mw_ref[...] = ((rw == r) & (jnp.abs(cw - c) == 1)).astype(jnp.float32) * inv_w
        acc_h_ref[...] = jnp.zeros_like(acc_h_ref)
        acc_w_ref[...] = jnp.zeros_like(acc_w_ref)

    def _accumulate():
        # Hot loop: rolls (XLU) + sub/mul/add (VPU).  No masks, no normalize,
        # no cross-sublane reduce here.
        x = x_ref[...]                        # (bc_tile, HW)
        xh = pltpu.roll(x, shift_h, 1)        # vertical neighbour (+/- W)
        xw = pltpu.roll(x, shift_w, 1)        # horizontal neighbour (+/- 1)
        dh = (xh - x).astype(jnp.float32)
        dw = (xw - x).astype(jnp.float32)
        dh2 = dh * dh
        dw2 = dw * dw

        bc_tile = x_ref.shape[0]
        acc_rows = acc_h_ref.shape[0]
        if bc_tile == acc_rows:
            ah, aw = dh2, dw2
        elif acc_rows == 1:
            ah = jnp.sum(dh2, axis=0, keepdims=True)
            aw = jnp.sum(dw2, axis=0, keepdims=True)
        else:
            g = bc_tile // acc_rows
            if g <= 32:
                # Sublane-aligned static slices -> pure vreg adds.
                ah = dh2[0:acc_rows, :]
                aw = dw2[0:acc_rows, :]
                for k in range(1, g):
                    sl = slice(k * acc_rows, (k + 1) * acc_rows)
                    ah = ah + dh2[sl, :]
                    aw = aw + dw2[sl, :]
            else:
                hw = x_ref.shape[1]
                ah = jnp.sum(dh2.reshape(g, acc_rows, hw), axis=0)
                aw = jnp.sum(dw2.reshape(g, acc_rows, hw), axis=0)
        acc_h_ref[...] += ah
        acc_w_ref[...] += aw

    if guard:
        # Odd step count split over 2 cores: the duplicated (clamped) last
        # block must not be accumulated twice.
        @pl.when(p * inner + i < steps)
        def _():
            _accumulate()
    else:
        _accumulate()

    @pl.when(i == pl.num_programs(1) - 1)
    def _finish():
        h_sum = jnp.sum(acc_h_ref[...], axis=0, keepdims=True)   # (1, HW)
        w_sum = jnp.sum(acc_w_ref[...], axis=0, keepdims=True)
        out = h_sum * mh_ref[...] + w_sum * mw_ref[...]
        out_ref[...] = out.reshape(out_ref.shape)


def _vmem_capacity_bytes():
    try:
        info = pltpu.get_tpu_info()
        cap = getattr(info, "vmem_capacity_bytes", None)
        if cap:
            return int(cap)
    except Exception:
        pass
    return 64 << 20   # conservative default: fits every generation (v7x = 64 MiB/TC)


def _choose_tiling(BC, HW, itemsize, target_block_bytes):
    """Largest sublane-aligned bc_tile dividing BC whose block fits the target."""
    cands = [d for d in range(8, BC + 1, 8) if BC % d == 0]
    if not cands:
        return BC, 1                          # tiny / unaligned B*C: one full block
    fitting = [d for d in cands if d * HW * itemsize <= target_block_bytes]
    bc_tile = max(fitting) if fitting else min(cands)
    if BC // bc_tile < 2:
        # Prefer >=2 grid steps so double-buffering overlaps DMA with compute,
        # but only if blocks stay >=1 MiB (per-step overhead ~0.35 us).
        smaller = [d for d in cands if d < bc_tile and d * HW * itemsize >= (1 << 20)]
        if smaller:
            bc_tile = max(smaller)
    return bc_tile, BC // bc_tile


def tv_loss(x, *, target_block_bytes=None):
    """Pallas TV loss. x: (B, C, H, W) float array. Returns a scalar f32."""
    B, C, H, W = x.shape
    BC, HW = B * C, H * W
    xf = x.reshape(BC, HW)                                # free row-major collapse

    j = jnp.arange(HW, dtype=jnp.int32)
    rowcol = jnp.stack([j // W, j % W], axis=0)           # (2, HW) image row / col ids

    count_h = C * (H - 1) * W
    count_w = C * H * (W - 1)
    inv_h = (1.0 / count_h) if count_h > 0 else 0.0
    inv_w = (1.0 / count_w) if count_w > 0 else 0.0
    if H == 2:
        inv_h *= 0.5   # +W and -W rolls coincide mod H*W: each pair counted twice
    shift_h = (HW - W) % HW
    shift_w = (HW - 1) % HW

    itemsize = jnp.dtype(x.dtype).itemsize
    vmem_cap = _vmem_capacity_bytes()

    # (8, HW) f32 accumulators unless that alone would eat too much VMEM.
    acc_rows_cand = 8 if (16 * HW * 4) <= (8 << 20) else 1
    scratch_est = (2 * acc_rows_cand + 2) * HW * 4

    if target_block_bytes is None:
        # Generation-aware block target; leave room for 2 pipeline buffers plus
        # a few block-sized roll/elementwise temporaries inside the kernel.
        gen_cap = (12 << 20) if vmem_cap >= (100 << 20) else (6 << 20)
        avail = max((vmem_cap * 3) // 4 - scratch_est - (2 << 20), 1 << 20)
        target_block_bytes = max(min(gen_cap, avail // 7), 256 << 10)

    bc_tile, steps = _choose_tiling(BC, HW, itemsize, target_block_bytes)

    n_par = 2 if steps >= 2 else 1                        # engage both v7x TensorCores
    inner = (steps + n_par - 1) // n_par
    guard = (n_par * inner != steps)                      # odd steps: duplicate last block

    acc_rows = acc_rows_cand if bc_tile % 8 == 0 else bc_tile
    block_bytes = bc_tile * HW * itemsize
    scratch_bytes = (2 * acc_rows + 2) * HW * 4

    limit_cap = min(100 << 20, (vmem_cap * 85) // 100)    # ~54 MiB on v7x, 100 MiB on v5e/v6e
    vmem_limit = int(min(limit_cap,
                         max(32 << 20,
                             7 * block_bytes + scratch_bytes + 6 * HW * 4 + (2 << 20))))

    if guard:
        last = steps - 1
        x_index = lambda p, i: (jnp.minimum(p * inner + i, last), 0)
    else:
        x_index = lambda p, i: (p * inner + i, 0)

    kernel = functools.partial(
        _tv_kernel,
        shift_h=shift_h, shift_w=shift_w,
        inv_h=float(inv_h), inv_w=float(inv_w),
        steps=steps, inner=inner, guard=guard)

    out = pl.pallas_call(
        kernel,
        out_shape=jax.ShapeDtypeStruct((n_par, 1, HW), jnp.float32),
        grid_spec=pltpu.PrefetchScalarGridSpec(
            num_scalar_prefetch=0,
            grid=(n_par, inner),
            in_specs=[
                pl.BlockSpec((bc_tile, HW), x_index),
                pl.BlockSpec((2, HW), lambda p, i: (0, 0)),
            ],
            out_specs=pl.BlockSpec((1, 1, HW), lambda p, i: (p, 0, 0)),
            scratch_shapes=[
                pltpu.VMEM((acc_rows, HW), jnp.float32),   # unmasked sum of dh^2
                pltpu.VMEM((acc_rows, HW), jnp.float32),   # unmasked sum of dw^2
                pltpu.VMEM((1, HW), jnp.float32),          # mask_h * (1/count_h)
                pltpu.VMEM((1, HW), jnp.float32),          # mask_w * (1/count_w)
            ],
        ),
        compiler_params=pltpu.CompilerParams(
            dimension_semantics=("parallel", "arbitrary"),
            vmem_limit_bytes=vmem_limit,
        ),
        cost_estimate=pl.CostEstimate(
            flops=int(6 * BC * HW),
            transcendentals=0,
            bytes_accessed=int(BC * HW * itemsize + 2 * HW * 4 + n_par * HW * 4),
        ),
    )(xf, rowcol)

    # Per-core partial vectors are already mask-scaled; tiny final reduce here.
    return jnp.sum(out)


def tv_loss_ref(x):
    """Pure-JAX reference matching the PyTorch forward."""
    B, C, H, W = x.shape
    count_h = C * (H - 1) * W
    count_w = C * H * (W - 1)
    h_tv = jnp.sum((x[:, :, 1:, :] - x[:, :, :-1, :]).astype(jnp.float32) ** 2)
    w_tv = jnp.sum((x[:, :, :, 1:] - x[:, :, :, :-1]).astype(jnp.float32) ** 2)
    return h_tv / count_h + w_tv / count_w


if __name__ == "__main__":
    key = jax.random.PRNGKey(0)
    ks = jax.random.split(key, 5)

    def check(x, name, **kw):
        out = jax.block_until_ready(tv_loss(x, **kw))
        ref = tv_loss_ref(x)
        assert jnp.allclose(out, ref, rtol=1e-4, atol=1e-5), (name, out, ref)

    # Primary shape implied by the module spec.
    check(jax.random.normal(ks[0], (2, 4, 16, 16), jnp.float32), "base")

    # Larger case: multiple-of-8 rows, lane-dense HW, single big block.
    check(jax.random.normal(ks[1], (4, 8, 32, 32), jnp.float32), "larger")

    # Force a multi-step grid with an ODD step count (3): exercises the
    # two-core "parallel" split plus the clamped/guarded duplicate last block.
    check(jax.random.normal(ks[2], (3, 8, 32, 32), jnp.float32), "odd-steps",
          target_block_bytes=8 * 32 * 32 * 4)

    # H == 2 (wrap-around double-count correction) and B*C not a multiple of 8.
    check(jax.random.normal(ks[3], (2, 3, 2, 128), jnp.float32), "H=2")

    # H == 3 (one-sided vertical mask).
    check(jax.random.normal(ks[4], (1, 4, 3, 128), jnp.float32), "H=3")

    print("KERNEL_OK")
</pallas_src>

<mosaic_0001>
module attributes {stable_mosaic.version = 11 : i64} {
  func.func @_tv_kernel(%arg0: i32, %arg1: i32, %arg2: memref<8x256xf32, #tpu.memory_space<vmem>>, %arg3: memref<2x256xi32, #tpu.memory_space<vmem>>, %arg4: memref<1x1x256xf32, #tpu.memory_space<vmem>>, %arg5: memref<8x256xf32, #tpu.memory_space<vmem>>, %arg6: memref<8x256xf32, #tpu.memory_space<vmem>>, %arg7: memref<1x256xf32, #tpu.memory_space<vmem>>, %arg8: memref<1x256xf32, #tpu.memory_space<vmem>>) attributes {dimension_semantics = [#tpu.dimension_semantics<parallel>, #tpu.dimension_semantics<arbitrary>], iteration_bounds = array<i64: 1, 1>, scalar_prefetch = 0 : i64, scratch_operands = 4 : i64, tpu.core_type = #tpu.core_type<tc>, window_params = [{transform_indices = @transform_0, window_bounds = array<i64: 8, 256>}, {pipeline_mode = #tpu.pipeline_mode<synchronous>, transform_indices = @transform_1, window_bounds = array<i64: 2, 256>}, {transform_indices = @transform_2, window_bounds = array<i64: 1, 1, 256>}]} {
    %c0_i32 = arith.constant 0 : i32
    %0 = arith.cmpi eq, %arg1, %c0_i32 : i32
    %1 = arith.extui %0 : i1 to i32
    %c0_i32_0 = arith.constant 0 : i32
    %2 = arith.cmpi ne, %1, %c0_i32_0 : i32
    scf.if %2 {
      %c0_12 = arith.constant 0 : index
      %c0_13 = arith.constant 0 : index
      %19 = vector.load %arg3[%c0_12, %c0_13] : memref<2x256xi32, #tpu.memory_space<vmem>>, vector<2x256xi32>
      %20 = vector.extract_strided_slice %19 {offsets = [0, 0], sizes = [1, 256], strides = [1, 1]} : vector<2x256xi32> to vector<1x256xi32>
      %21 = vector.extract_strided_slice %19 {offsets = [1, 0], sizes = [1, 256], strides = [1, 1]} : vector<2x256xi32> to vector<1x256xi32>
      %c240_i32_14 = arith.constant 240 : i32
      %22 = tpu.dynamic_rotate %20 by %c240_i32_14 dim 1 : vector<1x256xi32>, i32 -> vector<1x256xi32>
      %c255_i32_15 = arith.constant 255 : i32
      %23 = tpu.dynamic_rotate %20 by %c255_i32_15 dim 1 : vector<1x256xi32>, i32 -> vector<1x256xi32>
      %c255_i32_16 = arith.constant 255 : i32
      %24 = tpu.dynamic_rotate %21 by %c255_i32_16 dim 1 : vector<1x256xi32>, i32 -> vector<1x256xi32>
      %25 = arith.subi %22, %20 : vector<1x256xi32>
      %26 = math.absi %25 : vector<1x256xi32>
      %c1_i32 = arith.constant 1 : i32
      %27 = vector.broadcast %c1_i32 : i32 to vector<1x256xi32>
      %28 = arith.cmpi eq, %26, %27 : vector<1x256xi32>
      %29 = arith.extui %28 : vector<1x256xi1> to vector<1x256xi32>
      %30 = arith.sitofp %29 : vector<1x256xi32> to vector<1x256xf32>
      %cst = arith.constant 0.00104166672 : f32
      %31 = vector.broadcast %cst : f32 to vector<1x256xf32>
      %32 = arith.mulf %30, %31 : vector<1x256xf32>
      %c0_17 = arith.constant 0 : index
      %c0_18 = arith.constant 0 : index
      %33 = vector.load %arg7[%c0_17, %c0_18] : memref<1x256xf32, #tpu.memory_space<vmem>>, vector<1x256xf32>
      tpu.vector_store %arg7[%c0_17, %c0_18], %32 {strides = array<i32>} : memref<1x256xf32, #tpu.memory_space<vmem>>, vector<1x256xf32>,
      %34 = arith.cmpi eq, %23, %20 : vector<1x256xi32>
      %35 = arith.subi %24, %21 : vector<1x256xi32>
      %36 = math.absi %35 : vector<1x256xi32>
      %c1_i32_19 = arith.constant 1 : i32
      %37 = vector.broadcast %c1_i32_19 : i32 to vector<1x256xi32>
      %38 = arith.cmpi eq, %36, %37 : vector<1x256xi32>
      %39 = arith.andi %34, %38 : vector<1x256xi1>
      %40 = arith.extui %39 : vector<1x256xi1> to vector<1x256xi32>
      %41 = arith.sitofp %40 : vector<1x256xi32> to vector<1x256xf32>
      %cst_20 = arith.constant 0.00104166672 : f32
      %42 = vector.broadcast %cst_20 : f32 to vector<1x256xf32>
      %43 = arith.mulf %41, %42 : vector<1x256xf32>
      %c0_21 = arith.constant 0 : index
      %c0_22 = arith.constant 0 : index
      %44 = vector.load %arg8[%c0_21, %c0_22] : memref<1x256xf32, #tpu.memory_space<vmem>>, vector<1x256xf32>
      tpu.vector_store %arg8[%c0_21, %c0_22], %43 {strides = array<i32>} : memref<1x256xf32, #tpu.memory_space<vmem>>, vector<1x256xf32>,
      %cst_23 = arith.constant 0.000000e+00 : f32
      %45 = vector.broadcast %cst_23 : f32 to vector<8x256xf32>
      %c0_24 = arith.constant 0 : index
      %c0_25 = arith.constant 0 : index
      %46 = vector.load %arg5[%c0_24, %c0_25] : memref<8x256xf32, #tpu.memory_space<vmem>>, vector<8x256xf32>
      tpu.vector_store %arg5[%c0_24, %c0_25], %45 {strides = array<i32>} : memref<8x256xf32, #tpu.memory_space<vmem>>, vector<8x256xf32>,
      %cst_26 = arith.constant 0.000000e+00 : f32
      %47 = vector.broadcast %cst_26 : f32 to vector<8x256xf32>
      %c0_27 = arith.constant 0 : index
      %c0_28 = arith.constant 0 : index
      %48 = vector.load %arg6[%c0_27, %c0_28] : memref<8x256xf32, #tpu.memory_space<vmem>>, vector<8x256xf32>
      tpu.vector_store %arg6[%c0_27, %c0_28], %47 {strides = array<i32>} : memref<8x256xf32, #tpu.memory_space<vmem>>, vector<8x256xf32>,
    } else {
    }
    %c0 = arith.constant 0 : index
    %c0_1 = arith.constant 0 : index
    %3 = vector.load %arg2[%c0, %c0_1] : memref<8x256xf32, #tpu.memory_space<vmem>>, vector<8x256xf32>
    %c240_i32 = arith.constant 240 : i32
    %4 = tpu.dynamic_rotate %3 by %c240_i32 dim 1 : vector<8x256xf32>, i32 -> vector<8x256xf32>
    %c255_i32 = arith.constant 255 : i32
    %5 = tpu.dynamic_rotate %3 by %c255_i32 dim 1 : vector<8x256xf32>, i32 -> vector<8x256xf32>
    %6 = arith.subf %4, %3 : vector<8x256xf32>
    %7 = arith.subf %5, %3 : vector<8x256xf32>
    %8 = arith.mulf %6, %6 : vector<8x256xf32>
    %9 = arith.mulf %7, %7 : vector<8x256xf32>
    %c0_2 = arith.constant 0 : index
    %c0_3 = arith.constant 0 : index
    %10 = vector.load %arg5[%c0_2, %c0_3] : memref<8x256xf32, #tpu.memory_space<vmem>>, vector<8x256xf32>
    %11 = arith.addf %10, %8 : vector<8x256xf32>
    %c0_4 = arith.constant 0 : index
    %c0_5 = arith.constant 0 : index
    %12 = vector.load %arg5[%c0_4, %c0_5] : memref<8x256xf32, #tpu.memory_space<vmem>>, vector<8x256xf32>
    tpu.vector_store %arg5[%c0_4, %c0_5], %11 {strides = array<i32>} : memref<8x256xf32, #tpu.memory_space<vmem>>, vector<8x256xf32>,
    %c0_6 = arith.constant 0 : index
    %c0_7 = arith.constant 0 : index
    %13 = vector.load %arg6[%c0_6, %c0_7] : memref<8x256xf32, #tpu.memory_space<vmem>>, vector<8x256xf32>
    %14 = arith.addf %13, %9 : vector<8x256xf32>
    %c0_8 = arith.constant 0 : index
    %c0_9 = arith.constant 0 : index
    %15 = vector.load %arg6[%c0_8, %c0_9] : memref<8x256xf32, #tpu.memory_space<vmem>>, vector<8x256xf32>
    tpu.vector_store %arg6[%c0_8, %c0_9], %14 {strides = array<i32>} : memref<8x256xf32, #tpu.memory_space<vmem>>, vector<8x256xf32>,
    %c0_i32_10 = arith.constant 0 : i32
    %16 = arith.cmpi eq, %arg1, %c0_i32_10 : i32
    %17 = arith.extui %16 : i1 to i32
    %c0_i32_11 = arith.constant 0 : i32
    %18 = arith.cmpi ne, %17, %c0_i32_11 : i32
    scf.if %18 {
      %c0_12 = arith.constant 0 : index
      %c0_13 = arith.constant 0 : index
      %19 = vector.load %arg5[%c0_12, %c0_13] : memref<8x256xf32, #tpu.memory_space<vmem>>, vector<8x256xf32>
      %cst = arith.constant dense<0.000000e+00> : vector<256xf32>
      %20 = vector.multi_reduction <add>, %19, %cst [0] : vector<8x256xf32> to vector<256xf32>
      %21 = vector.shape_cast %20 : vector<256xf32> to vector<1x256xf32>
      %c0_14 = arith.constant 0 : index
      %c0_15 = arith.constant 0 : index
      %22 = vector.load %arg6[%c0_14, %c0_15] : memref<8x256xf32, #tpu.memory_space<vmem>>, vector<8x256xf32>
      %cst_16 = arith.constant dense<0.000000e+00> : vector<256xf32>
      %23 = vector.multi_reduction <add>, %22, %cst_16 [0] : vector<8x256xf32> to vector<256xf32>
      %24 = vector.shape_cast %23 : vector<256xf32> to vector<1x256xf32>
      %c0_17 = arith.constant 0 : index
      %c0_18 = arith.constant 0 : index
      %25 = vector.load %arg7[%c0_17, %c0_18] : memref<1x256xf32, #tpu.memory_space<vmem>>, vector<1x256xf32>
      %26 = arith.mulf %21, %25 : vector<1x256xf32>
      %c0_19 = arith.constant 0 : index
      %c0_20 = arith.constant 0 : index
      %27 = vector.load %arg8[%c0_19, %c0_20] : memref<1x256xf32, #tpu.memory_space<vmem>>, vector<1x256xf32>
      %28 = arith.mulf %24, %27 : vector<1x256xf32>
      %29 = arith.addf %26, %28 : vector<1x256xf32>
      %30 = vector.shape_cast %29 : vector<1x256xf32> to vector<1x1x256xf32>
      %c0_21 = arith.constant 0 : index
      %c0_22 = arith.constant 0 : index
      %c0_23 = arith.constant 0 : index
      %31 = vector.load %arg4[%c0_21, %c0_22, %c0_23] : memref<1x1x256xf32, #tpu.memory_space<vmem>>, vector<1x1x256xf32>
      tpu.vector_store %arg4[%c0_21, %c0_22, %c0_23], %30 {strides = array<i32>} : memref<1x1x256xf32, #tpu.memory_space<vmem>>, vector<1x1x256xf32>,
    } else {
    }
    return
  }
  func.func @transform_0(%arg0: i32, %arg1: i32) -> (i32, i32) {
    %c1_i32 = arith.constant 1 : i32
    %0 = arith.muli %arg0, %c1_i32 : i32
    %1 = arith.addi %0, %arg1 : i32
    %c0_i32 = arith.constant 0 : i32
    %c0_i32_0 = arith.constant 0 : i32
    return %1, %c0_i32 : i32, i32
  }
  func.func @transform_1(%arg0: i32, %arg1: i32) -> (i32, i32) {
    %c0_i32 = arith.constant 0 : i32
    %c0_i32_0 = arith.constant 0 : i32
    %c0_i32_1 = arith.constant 0 : i32
    return %c0_i32, %c0_i32_0 : i32, i32
  }
  func.func @transform_2(%arg0: i32, %arg1: i32) -> (i32, i32, i32) {
    %c0_i32 = arith.constant 0 : i32
    %c0_i32_0 = arith.constant 0 : i32
    %c0_i32_1 = arith.constant 0 : i32
    return %arg0, %c0_i32, %c0_i32_0 : i32, i32, i32
  }
}

</mosaic_0001>

<bundles_post_ra>
// kernel: tpu_custom_call.1
= control target key start
LH: loop header
LB: loop body
LE: loop exit
PB: predicated region body
PF: predicated region fallthrough
CT: control target
= control target key end

     0   :  { %7 = vsyncpa [#allocation7], 0  ;;  %s503_s0 = inlined_call_operand.hbm [shape: f32[8,256], index: 0, kind: input, shape index: {}]   ;;  %s504_s1 = inlined_call_operand.hbm [shape: s32[2,256], index: 1, kind: input, shape index: {}]   ;;  %s505_s2 = inlined_call_operand.hbm [shape: f32[1,1,256], index: 2, kind: output, shape index: {}]  }
   0x1   :  { %8 = vsyncpa [#allocation10], 0 }
   0x2   :  { %9 = vsyncpa [#allocation8], 0  ;;  %s391_s9 = smov [#allocation6]   ;;  %s392_s11 = smov [#allocation9]  }
   0x3   :  { %s20_s10 = sshll.u32 %s391_s9, 4  ;;  %s30_s12 = sshll.u32 %s392_s11, 4  ;;  %s21_s10 = int_to_ptr.vmem [resolvable:$true] %s20_s10  ;;  %s31_s12 = int_to_ptr.vmem [resolvable:$true] %s30_s12 }
   0x4   :  { %s319_s15 = scalar_lea.hbm %s503_s0, 256 }
   0x5   :  { %p320_p0 = scmp.ne.s32.totalorder %s503_s0, %s319_s15  ;;  %p323_p1 = scmp.lt.u32.totalorder %s319_s15, %s503_s0 }
   0x7   :  { %p325_p2 = pnand %p323_p1, %p320_p0 }
   0x9   :  { %328 = shalt.err (!%p325_p2)
}
   0xa   :  { %s329_s20 = scalar_lea.vmem %s21_s10, 256  ;;  %p334_p4 = scmp.lt.s32.totalorder %s21_s10, %s21_s10 }
   0xb   :  { %p330_p3 = scmp.ne.s32.totalorder %s21_s10, %s329_s20  ;;  %p335_p5 = scmp.lt.s32.totalorder %s329_s20, %s329_s20 }
   0xd   :  { %p336_p6 = por %p335_p5, %p334_p4 }
   0xf   :  { %p337_p7 = pnand %p336_p6, %p330_p3 }
  0x11   :  { %340 = shalt.err (!%p337_p7)
}
  0x12   :  { %23 = dma.hbm_to_vmem [thread:$0]  %s503_s0, 256, %s21_s10, [#allocation7]  }
  0x13   :  { %s341_s25 = scalar_lea.hbm %s504_s1, 64 }
  0x14   :  { %p342_p8 = scmp.ne.s32.totalorder %s504_s1, %s341_s25  ;;  %p345_p9 = scmp.lt.u32.totalorder %s341_s25, %s504_s1 }
  0x16   :  { %p347_p10 = pnand %p345_p9, %p342_p8 }
  0x18   :  { %350 = shalt.err (!%p347_p10)
}
  0x19   :  { %s351_s30 = scalar_lea.vmem %s31_s12, 64  ;;  %p356_p12 = scmp.lt.s32.totalorder %s31_s12, %s31_s12 }
  0x1a   :  { %p352_p11 = scmp.ne.s32.totalorder %s31_s12, %s351_s30  ;;  %p357_p13 = scmp.lt.s32.totalorder %s351_s30, %s351_s30 }
  0x1c   :  { %p358_p0 = por %p357_p13, %p356_p12 }
  0x1e   :  { %p359_p1 = pnand %p358_p0, %p352_p11 }
  0x20   :  { %362 = shalt.err (!%p359_p1)
}
  0x21   :  { %33 = dma.hbm_to_vmem [thread:$0]  %s504_s1, 64, %s31_s12, [#allocation10]  }
  0x22   :  { %385 = dma.done.wait [#allocation7], 256  }
  0x23   :  { %386 = vsyncadd [#allocation7], 4294967040 }
  0x24   :  { %387 = dma.done.wait [#allocation10], 64  }
  0x25   :  { %388 = vsyncadd [#allocation10], 4294967232  ;;  %v46_v0 = vlaneseq  ;;  %v45_v6 = vld [vmem:[#allocation9] sm:$0xf]  ;;  %s393_s4 = smov 127   ;;  %s394_s1 = smov 112  }
  0x26   :  { %v444_v11 = vld [vmem:[#allocation6] sm:$0xff]  ;;  %v446_v12 = vld [vmem:[#allocation6 + $0x8] sm:$0xff]  ;;  %v395_v16 = vmov 1966171168   ;;  %v396_v44 = vmov 0.0   ;;  %s397_s5 = smov [#allocation11]  }
  0x27   :  { %v47_v1 = vshrl.u32 %v46_v0, 7  ;;  %v59_v13 = vand.u32 127, %v46_v0  ;;  %v104_v17 = vunpack.c.l.s4 %v395_v16  ;;  %vm472_vm10 = vcmp.lt.s32.totalorder %v46_v0, 256  ;;  %s294_s6 = sshll.u32 %s397_s5, 4  ;;  %s295_s6 = int_to_ptr.vmem [resolvable:$true] %s294_s6 }
  0x28   :  { %s363_s7 = scalar_lea.vmem %s295_s6, 32  ;;  %p368_p3 = scmp.lt.s32.totalorder %s295_s6, %s295_s6 }
  0x29   :  { %v438_v2 = vsub.s32 1, %v47_v1  ;;  %v440_v3 = vsub.s32 0, %v47_v1  ;;  %v76_v4 = vsub.s32 3, %v47_v1  ;;  %v52_v5 = vsub.s32 2, %v47_v1  ;;  %p364_p2 = scmp.ne.s32.totalorder %s295_s6, %s363_s7  ;;  %p369_p4 = scmp.lt.s32.totalorder %s363_s7, %s363_s7 }
  0x2a   :  { %vm67_vm0 = vcmp.lt.s32.totalorder %v59_v13, 127  ;;  %vm60_vm1 = vcmp.lt.s32.totalorder %v59_v13, 112  ;;  %v105_v28 = vunpack.c.0.s8 %v104_v17 }
  0x2b   :  { %v73_v7 = vrot.slane %v45_v6, %v438_v2  ;;  %v49_v8 = vrot.slane %v45_v6, %v440_v3  ;;  %v77_v9 = vrot.slane %v45_v6, %v76_v4  ;;  %v53_v10 = vrot.slane %v45_v6, %v52_v5  ;;  %p370_p5 = por %p369_p4, %p368_p3 }
  0x2c   :  { %v459_v41 = vsub.s32 %v105_v28, %v47_v1 }
  0x2d   :  { %78 = vrot.lane.b32.xlu0 %v73_v7, %s393_s4  ;;  %54 = vrot.lane.b32.xlu1 %v49_v8, %s394_s1  ;;  %p371_p6 = pnand %p370_p5, %p364_p2 }
  0x31   :  { %80 = vrot.lane.b32.xlu0 %v77_v9, %s393_s4  ;;  %56 = vrot.lane.b32.xlu1 %v53_v10, %s394_s1 }
  0x35   :  { %63 = vrot.lane.b32.xlu0 %v49_v8, %s393_s4  ;;  %65 = vrot.lane.b32.xlu1 %v53_v10, %s393_s4 }
  0x39   :  { %168 = vrot.lane.b32.xlu0 %v444_v11, %s394_s1  ;;  %170 = vrot.lane.b32.xlu1 %v446_v12, %s394_s1 }
  0x3d   :  { %177 = vrot.lane.b32.xlu0 %v444_v11, %s393_s4  ;;  %179 = vrot.lane.b32.xlu1 %v446_v12, %s393_s4 }
  0x9f   :  { %v79_v14 = vpop.permute.xlu0 %78  ;;  %v55_v15 = vpop.permute.xlu1 %54 }
  0xa3   :  { %v81_v18 = vpop.permute.xlu0 %80  ;;  %v57_v19 = vpop.permute.xlu1 %56 }
  0xa4   :  { %v82_v20 = vsel %vm67_vm0, %v79_v14, %v81_v18  ;;  %v83_v21 = vsel %vm67_vm0, %v81_v18, %v79_v14  ;;  %v61_v22 = vsel %vm60_vm1, %v55_v15, %v57_v19  ;;  %v62_v23 = vsel %vm60_vm1, %v57_v19, %v55_v15 }
  0xa5   :  { %v125_v24 = vsub.s32 %v82_v20, %v73_v7  ;;  %v126_v25 = vsub.s32 %v83_v21, %v77_v9  ;;  %v84_v26 = vsub.s32 %v61_v22, %v49_v8  ;;  %v85_v27 = vsub.s32 %v62_v23, %v53_v10 }
  0xa7   :  { %v128_v29 = vsub.s32 0, %v125_v24  ;;  %v131_v30 = vsub.s32 0, %v126_v25  ;;  %v87_v31 = vsub.s32 0, %v84_v26  ;;  %v90_v32 = vsub.s32 0, %v85_v27  ;;  %v64_v33 = vpop.permute.xlu0 %63  ;;  %v66_v34 = vpop.permute.xlu1 %65 }
  0xa8   :  { %v68_v35 = vsel %vm67_vm0, %v64_v33, %v66_v34  ;;  %v69_v36 = vsel %vm67_vm0, %v66_v34, %v64_v33 }
  0xa9   :  { %v308_v37 = vmin.u32 %v128_v29, %v125_v24  ;;  %v309_v38 = vmin.u32 %v131_v30, %v126_v25  ;;  %v304_v39 = vmin.u32 %v87_v31, %v84_v26  ;;  %v305_v40 = vmin.u32 %v90_v32, %v85_v27 }
  0xaa   :  { %vm123_vm2 = vcmp.eq.s32.totalorder %v68_v35, %v49_v8  ;;  %vm124_vm3 = vcmp.eq.s32.totalorder %v69_v36, %v53_v10 }
  0xab   :  { %vm92_vm4 = vcmp.eq.s32.totalorder %v304_v39, 1  ;;  %vm93_vm5 = vcmp.eq.s32.totalorder %v305_v40, 1  ;;  %vm133_vm6 = vcmp.eq.s32.totalorder %v308_v37, 1  ;;  %vm134_vm7 = vcmp.eq.s32.totalorder %v309_v38, 1  ;;  %v169_v42 = vpop.permute.xlu0 %168  ;;  %v171_v43 = vpop.permute.xlu1 %170 }
  0xac   :  { %v306_v45 = vsel %vm92_vm4, 1.0, %v396_v44  ;;  %v307_v46 = vsel %vm93_vm5, 1.0, %v396_v44  ;;  %vm135_vm8 = vmand %vm123_vm2, %vm133_vm6  ;;  %v175_v47 = vsel %vm60_vm1, %v169_v42, %v171_v43  ;;  %v176_v48 = vsel %vm60_vm1, %v171_v43, %v169_v42 }
  0xad   :  { %v98_v49 = vmul.f32 0.0010416667, %v306_v45  ;;  %v99_v50 = vmul.f32 0.0010416667, %v307_v46  ;;  %vm136_vm9 = vmand %vm124_vm3, %vm134_vm7  ;;  %v310_v51 = vsel %vm135_vm8, 1.0, %v396_v44  ;;  %v184_v52 = vsub.f32 %v175_v47, %v444_v11 }
  0xae   :  { %v311_v53 = vsel %vm136_vm9, 1.0, %v396_v44  ;;  %v141_v54 = vmul.f32 0.0010416667, %v310_v51  ;;  %v185_v55 = vsub.f32 %v176_v48, %v446_v12 }
  0xaf   :  { %v102_v56 = vcombine.low %v98_v49, %v99_v50  ;;  %v142_v57 = vmul.f32 0.0010416667, %v311_v53  ;;  %v188_v58 = vmul.f32 %v184_v52, %v184_v52  ;;  %v178_v59 = vpop.permute.xlu0 %177  ;;  %v180_v60 = vpop.permute.xlu1 %179 }
  0xb0   :  { %v189_v61 = vmul.f32 %v185_v55, %v185_v55  ;;  %v182_v62 = vsel %vm67_vm0, %v178_v59, %v180_v60  ;;  %v183_v63 = vsel %vm67_vm0, %v180_v60, %v178_v59 }
  0xb1   :  { %v109_v1 = vrot.slane %v102_v56, %v459_v41  ;;  %v145_v4 = vcombine.low %v141_v54, %v142_v57  ;;  %v209_v5 = vrot.slane %v188_v58, 4  ;;  %v186_v6 = vsub.f32 %v182_v62, %v444_v11 }
  0xb2   :  { %v215_v7 = vrot.slane %v189_v61, 4  ;;  %v187_v8 = vsub.f32 %v183_v63, %v446_v12 }
  0xb3   :  { %v152_v10 = vrot.slane %v145_v4, %v459_v41  ;;  %v210_v14 = vadd.f32 %v209_v5, %v188_v58  ;;  %v190_v15 = vmul.f32 %v186_v6, %v186_v6  ;;  %v116_v13 = vrot.slane %v109_v1, %v459_v41 }
  0xb4   :  { %v216_v16 = vadd.f32 %v215_v7, %v189_v61  ;;  %v191_v17 = vmul.f32 %v187_v8, %v187_v8 }
  0xb5   :  { %v211_v18 = vrot.slane %v210_v14, 2  ;;  %v223_v19 = vrot.slane %v190_v15, 4  ;;  %122 = vst.msk [vmem:[#allocation4] sm:$0x3] %vm472_vm10, %v116_v13  ;;  %v159_v11 = vrot.slane %v152_v10, %v459_v41 }
  0xb6   :  { %v217_v12 = vrot.slane %v216_v16, 2  ;;  %v229_v0 = vrot.slane %v191_v17, 4 }
  0xb7   :  { %v212_v20 = vadd.f32 %v211_v18, %v210_v14  ;;  %v224_v21 = vadd.f32 %v223_v19, %v190_v15  ;;  %161 = vst.msk [vmem:[#allocation5] sm:$0x3] %vm472_vm10, %v159_v11 }
  0xb8   :  { %v218_v22 = vadd.f32 %v217_v12, %v216_v16  ;;  %v230_v23 = vadd.f32 %v229_v0, %v191_v17 }
  0xb9   :  { %v225_v24 = vrot.slane %v224_v21, 2  ;;  %v213_v26 = vrot.slane %v212_v20, 1 }
  0xba   :  { %v231_v25 = vrot.slane %v230_v23, 2  ;;  %v219_v28 = vrot.slane %v218_v22, 1 }
  0xbb   :  { %v226_v27 = vadd.f32 %v225_v24, %v224_v21  ;;  %v214_v36 = vadd.f32 %v213_v26, %v212_v20 }
  0xbc   :  { %v232_v29 = vadd.f32 %v231_v25, %v230_v23  ;;  %v235_v30 = vld [vmem:[#allocation4] sm:$0x3]  ;;  %v220_v39 = vadd.f32 %v219_v28, %v218_v22 }
  0xbd   :  { %v227_v31 = vrot.slane %v226_v27, 1  ;;  %v240_v32 = vrot.slane %v235_v30, %v440_v3  ;;  %v244_v34 = vrot.slane %v235_v30, %v438_v2 }
  0xbe   :  { %v233_v33 = vrot.slane %v232_v29, 1  ;;  %v249_v35 = vld [vmem:[#allocation5] sm:$0x3] }
  0xbf   :  { %v228_v37 = vadd.f32 %v227_v31, %v226_v27  ;;  %v254_v38 = vrot.slane %v249_v35, %v440_v3  ;;  %v258_v42 = vrot.slane %v249_v35, %v438_v2  ;;  %v247_v43 = vmul.f32 %v240_v32, %v214_v36 }
  0xc0   :  { %v234_v40 = vadd.f32 %v233_v33, %v232_v29  ;;  %v248_v45 = vmul.f32 %v244_v34, %v220_v39 }
  0xc1   :  { %v261_v44 = vmul.f32 %v254_v38, %v228_v37 }
  0xc2   :  { %v262_v46 = vmul.f32 %v258_v42, %v234_v40 }
  0xc3   :  { %v263_v47 = vadd.f32 %v261_v44, %v247_v43 }
  0xc4   :  { %v264_v48 = vadd.f32 %v262_v46, %v248_v45 }
  0xc6   :  { %v267_v49 = vcombine.low %v263_v47, %v264_v48 }
  0xc8   :  { %v274_v50 = vrot.slane %v267_v49, %v459_v41 }
  0xca   :  { %v281_v51 = vrot.slane %v274_v50, %v459_v41 }
  0xcc   :  { %287 = vst.msk [vmem:[#allocation11] sm:$0x3] %vm472_vm10, %v281_v51 }
  0xcd   :  { %374 = shalt.err (!%p371_p6)
}
  0xce   :  { %s375_s10 = scalar_lea.hbm %s505_s2, 32 }
  0xcf   :  { %p376_p7 = scmp.ne.s32.totalorder %s505_s2, %s375_s10  ;;  %p379_p8 = scmp.lt.u32.totalorder %s375_s10, %s505_s2 }
  0xd1   :  { %p381_p9 = pnand %p379_p8, %p376_p7 }
  0xd3   :  { %384 = shalt.err (!%p381_p9)
}
  0xd4   :  { %297 = dma.vmem_to_hbm [thread:$0]  %s295_s6, 32, %s505_s2, [#allocation8]  }
  0xd5   :  { %389 = dma.done.wait [#allocation8], 32  }
  0xd6   :  { %390 = vsyncadd [#allocation8], 4294967264 }
  0xd7   :  { %301 = vsyncpa [#allocation7], 1 }
  0xd8   :  { %302 = vsyncpa [#allocation10], 1 }
  0xd9   :  { %303 = vsyncpa [#allocation8], 1 }

</bundles_post_ra>
